<compile_context>
chip_gen: v5e
topology: v5e:2x2
jax: 0.10.0
libtpu: 0.0.40
codegen_flags: <defaults>
</compile_context>

<pallas_src>
import functools
import math

import jax
import jax.numpy as jnp
from jax import lax
from jax.experimental import pallas as pl
from jax.experimental.pallas import tpu as pltpu

_LANE = 128          # lane width
_SUB = 8             # sublane quantum
_R_TILE_MAX = 1024   # 4 * 1024 * 128 * 4B = 2 MiB per input block


def _round_up(x, m):
    return ((x + m - 1) // m) * m


def _fast_recip(x):
    """EUP approximate reciprocal refined by one Newton step (~1e-7 rel err)."""
    r = pl.reciprocal(x, approx=True)
    return r * (2.0 - x * r)


def _approx_atan(t):
    """arctan via a 5-term odd minimax polynomial on [0, 1] (|err| ~1e-5),
    with the |t| > 1 range reduction done through the EUP reciprocal."""
    a = jnp.abs(t)
    inv = _fast_recip(a)                  # only consumed where a > 1 (NaN at a==0 is masked)
    small = a <= 1.0
    r = jnp.where(small, a, inv)
    r2 = r * r
    p = jnp.float32(0.0208351)
    p = p * r2 + jnp.float32(-0.0851330)
    p = p * r2 + jnp.float32(0.1801410)
    p = p * r2 + jnp.float32(-0.3302995)
    p = p * r2 + jnp.float32(0.9998660)
    at = p * r
    at = jnp.where(small, at, jnp.float32(math.pi / 2) - at)
    return jnp.where(t < 0.0, -at, at)


def _ciou_loss_plane(pred_ref, tgt_ref, eps):
    """Per-box CIoU loss on one (R_TILE, 128) coordinate-planar block."""
    # Read per-coordinate planes straight off the refs (lower vreg pressure).
    b1_x1 = pred_ref[0]
    b1_y1 = pred_ref[1]
    b1_x2 = pred_ref[2]
    b1_y2 = pred_ref[3]
    b2_x1 = tgt_ref[0]
    b2_y1 = tgt_ref[1]
    b2_x2 = tgt_ref[2]
    b2_y2 = tgt_ref[3]

    # intersection
    iw = jnp.maximum(jnp.minimum(b1_x2, b2_x2) - jnp.maximum(b1_x1, b2_x1), 0.0)
    ih = jnp.maximum(jnp.minimum(b1_y2, b2_y2) - jnp.maximum(b1_y1, b2_y1), 0.0)
    overlap = iw * ih

    # widths / heights (eps only added for the arctan ratio terms, as in ref)
    w1 = b1_x2 - b1_x1
    h1 = b1_y2 - b1_y1
    w2 = b2_x2 - b2_x1
    h2 = b2_y2 - b2_y1

    # union / IoU
    union = w1 * h1 + w2 * h2 - overlap + eps
    ious = overlap * _fast_recip(union)

    # enclosing box diagonal
    cw = jnp.maximum(jnp.maximum(b1_x2, b2_x2) - jnp.minimum(b1_x1, b2_x1), 0.0)
    ch = jnp.maximum(jnp.maximum(b1_y2, b2_y2) - jnp.minimum(b1_y1, b2_y1), 0.0)
    c2 = cw * cw + ch * ch + eps

    # center distance
    dx = b2_x1 + b2_x2 - (b1_x1 + b1_x2)
    dy = b2_y1 + b2_y2 - (b1_y1 + b1_y2)
    rho2 = (dx * dx + dy * dy) * 0.25

    # aspect-ratio term:
    #   atan(w2/h2e) - atan(w1/h1e) = atan((w2*h1e - w1*h2e) / (h1e*h2e + w1*w2))
    # valid since both ratios are >= 0 for valid boxes (a*b > -1).
    h1e = h1 + eps
    h2e = h2 + eps
    num = w2 * h1e - w1 * h2e
    den = h1e * h2e + w1 * w2
    d_atan = _approx_atan(num * _fast_recip(den))
    factor = 4.0 / (math.pi ** 2)
    v = factor * d_atan * d_atan

    cious = ious - (rho2 * _fast_recip(c2)
                    + (v * v) * _fast_recip(1.0 - ious + v))
    return 1.0 - cious


def _mask_pad(loss, n, r_tile):
    """Zero out lanes whose global box index is >= n (padded boxes)."""
    row = lax.broadcasted_iota(jnp.int32, (r_tile, _LANE), 0)
    lane = lax.broadcasted_iota(jnp.int32, (r_tile, _LANE), 1)
    idx = (pl.program_id(0) * r_tile + row) * _LANE + lane
    return jnp.where(idx < n, loss, 0.0)


def _write_psum(psum_ref, loss):
    """Write per-lane sublane-reduced partial sums into the (1, 8, 128) block
    (only sublane 0 is non-zero); the wrapper sums the whole output exactly."""
    col = jnp.sum(loss, axis=0, keepdims=True)                 # (1, 128)
    sub = lax.broadcasted_iota(jnp.int32, (1, _SUB, _LANE), 1)
    psum_ref[...] = jnp.where(sub == 0, col[:, None, :], 0.0)


def _ciou_elementwise_kernel(pred_ref, tgt_ref, loss_ref, *, eps):
    loss_ref[...] = _ciou_loss_plane(pred_ref, tgt_ref, eps)


def _ciou_sum_kernel(pred_ref, tgt_ref, psum_ref, *, eps, n, r_tile):
    loss = _ciou_loss_plane(pred_ref, tgt_ref, eps)
    _write_psum(psum_ref, _mask_pad(loss, n, r_tile))


def _ciou_wsum_kernel(pred_ref, tgt_ref, w_ref, psum_ref, *, eps, n, r_tile):
    loss = _ciou_loss_plane(pred_ref, tgt_ref, eps) * w_ref[...]
    _write_psum(psum_ref, _mask_pad(loss, n, r_tile))


def _plan_tiles(n):
    """Pick (r_tile, rows). Guarantees grid >= 2 when rows_needed >= 16 so
    both v7x TensorCores get work; r_tile capped at 1024 rows (2 MiB block)."""
    rows_needed = max(1, -(-n // _LANE))
    if rows_needed >= 2 * _SUB:
        r_tile = min(_R_TILE_MAX, _round_up(-(-rows_needed // 2), _SUB))
    else:
        r_tile = _round_up(rows_needed, _SUB)
    rows = _round_up(rows_needed, r_tile)
    return r_tile, rows


def _to_planes(boxes, rows):
    """(n, 4) -> coordinate-planar (4, rows, 128) f32, zero padded."""
    # TODO(synk): this transpose+pad is one extra XLA pass over the inputs.
    # An in-kernel lane-deinterleave of the native (n, 4) layout (pltpu.roll +
    # selects) was evaluated but rejected: the 4x-redundant VALU work makes
    # this near-balanced kernel compute-bound, costing more than the pass.
    n = boxes.shape[0]
    npad = rows * _LANE
    return jnp.pad(boxes.astype(jnp.float32).T,
                   ((0, 0), (0, npad - n))).reshape(4, rows, _LANE)


def _ciou_elementwise(pred, target, eps):
    """Per-box CIoU loss, shape (n,) (reduction='none' path)."""
    n = pred.shape[0]
    r_tile, rows = _plan_tiles(n)
    pred_p = _to_planes(pred, rows)
    tgt_p = _to_planes(target, rows)
    grid_n = rows // r_tile

    out = pl.pallas_call(
        functools.partial(_ciou_elementwise_kernel, eps=eps),
        out_shape=jax.ShapeDtypeStruct((rows, _LANE), jnp.float32),
        grid_spec=pl.GridSpec(
            grid=(grid_n,),
            in_specs=[
                pl.BlockSpec((4, r_tile, _LANE), lambda i: (0, i, 0)),
                pl.BlockSpec((4, r_tile, _LANE), lambda i: (0, i, 0)),
            ],
            out_specs=pl.BlockSpec((r_tile, _LANE), lambda i: (i, 0)),
        ),
        compiler_params=pltpu.CompilerParams(
            dimension_semantics=("parallel",)),
    )(pred_p, tgt_p)
    return out.reshape(rows * _LANE)[:n]


def _ciou_weighted_sum(pred, target, weight, eps):
    """sum_i weight_i * ciou_loss_i (weight=None -> plain sum), fused in-kernel
    so the per-element loss plane never hits HBM (saves output write-back plus
    the separate XLA reduce pass)."""
    n = pred.shape[0]
    r_tile, rows = _plan_tiles(n)
    grid_n = rows // r_tile
    pred_p = _to_planes(pred, rows)
    tgt_p = _to_planes(target, rows)

    in_specs = [
        pl.BlockSpec((4, r_tile, _LANE), lambda i: (0, i, 0)),
        pl.BlockSpec((4, r_tile, _LANE), lambda i: (0, i, 0)),
    ]
    args = [pred_p, tgt_p]
    if weight is None:
        kern = functools.partial(_ciou_sum_kernel, eps=eps, n=n, r_tile=r_tile)
    else:
        w_p = jnp.pad(weight.astype(jnp.float32).reshape(-1),
                      (0, rows * _LANE - n)).reshape(rows, _LANE)
        in_specs.append(pl.BlockSpec((r_tile, _LANE), lambda i: (i, 0)))
        args.append(w_p)
        kern = functools.partial(_ciou_wsum_kernel, eps=eps, n=n, r_tile=r_tile)

    psum = pl.pallas_call(
        kern,
        out_shape=jax.ShapeDtypeStruct((grid_n, _SUB, _LANE), jnp.float32),
        grid_spec=pl.GridSpec(
            grid=(grid_n,),
            in_specs=in_specs,
            out_specs=pl.BlockSpec((1, _SUB, _LANE), lambda i: (i, 0, 0)),
        ),
        compiler_params=pltpu.CompilerParams(
            dimension_semantics=("parallel",)),
    )(*args)
    return jnp.sum(psum)


class CIoULossPallas:
    """JAX/Pallas equivalent of nanodet's CIoULoss (forward only)."""

    def __init__(self, eps=1e-6, reduction="mean", loss_weight=1.0):
        self.eps = eps
        self.reduction = reduction
        self.loss_weight = loss_weight

    def __call__(self, pred, target, weight=None, avg_factor=None,
                 reduction_override=None):
        # TODO(synk): the PyTorch early-return branch for an all-zero weight
        # tensor is data-dependent control flow and is not reproduced here.
        assert reduction_override in (None, "none", "mean", "sum")
        reduction = reduction_override if reduction_override else self.reduction
        n = pred.shape[0]

        if reduction == "none":
            loss = _ciou_elementwise(pred, target, self.eps)  # (n,)
            if weight is not None:
                loss = loss * weight.astype(loss.dtype)
            # avg_factor with 'none' leaves the per-element loss unchanged.
            return self.loss_weight * loss

        if avg_factor is not None and reduction != "mean":
            raise ValueError("avg_factor only valid with mean/none")

        total = _ciou_weighted_sum(pred, target, weight, self.eps)
        if reduction == "mean":
            denom = avg_factor if avg_factor is not None else n
            total = total / denom
        return self.loss_weight * total


def _ciou_reference(pred, target, eps):
    """Pure-JAX reference (faithful translation of the PyTorch code)."""
    lt = jnp.maximum(pred[:, :2], target[:, :2])
    rb = jnp.minimum(pred[:, 2:], target[:, 2:])
    wh = jnp.clip(rb - lt, 0.0)
    overlap = wh[:, 0] * wh[:, 1]
    ap = (pred[:, 2] - pred[:, 0]) * (pred[:, 3] - pred[:, 1])
    ag = (target[:, 2] - target[:, 0]) * (target[:, 3] - target[:, 1])
    union = ap + ag - overlap + eps
    ious = overlap / union
    e_lt = jnp.minimum(pred[:, :2], target[:, :2])
    e_rb = jnp.maximum(pred[:, 2:], target[:, 2:])
    ewh = jnp.clip(e_rb - e_lt, 0.0)
    c2 = ewh[:, 0] ** 2 + ewh[:, 1] ** 2 + eps
    w1 = pred[:, 2] - pred[:, 0]
    h1 = pred[:, 3] - pred[:, 1] + eps
    w2 = target[:, 2] - target[:, 0]
    h2 = target[:, 3] - target[:, 1] + eps
    left = (target[:, 0] + target[:, 2] - (pred[:, 0] + pred[:, 2])) ** 2 / 4
    right = (target[:, 1] + target[:, 3] - (pred[:, 1] + pred[:, 3])) ** 2 / 4
    rho2 = left + right
    factor = 4 / math.pi ** 2
    v = factor * (jnp.arctan(w2 / h2) - jnp.arctan(w1 / h1)) ** 2
    cious = ious - (rho2 / c2 + v ** 2 / (1 - ious + v))
    return 1 - cious


def _make_boxes(key, n):
    k1, k2 = jax.random.split(key)
    xy1 = jax.random.uniform(k1, (n, 2), jnp.float32, 0.0, 10.0)
    wh = jax.random.uniform(k2, (n, 2), jnp.float32, 1.0, 5.0)
    return jnp.concatenate([xy1, xy1 + wh], axis=1)


if __name__ == "__main__":
    key = jax.random.PRNGKey(0)
    kp, kt, kp2, kt2, kw = jax.random.split(key, 5)

    loss_mod = CIoULossPallas(eps=1e-6, reduction="mean", loss_weight=1.0)

    # --- small module-level test (n = 8 boxes, shape (n, 4)), mean path ---
    n = 8
    pred = _make_boxes(kp, n)
    target = _make_boxes(kt, n)
    out = loss_mod(pred, target)
    jax.block_until_ready(out)
    ref = jnp.mean(_ciou_reference(pred, target, 1e-6))
    assert jnp.allclose(out, ref, atol=1e-4, rtol=1e-4), (out, ref)

    # --- per-element ('none') test across multiple 128-lane rows (n = 300) ---
    n2 = 300
    pred2 = _make_boxes(kp2, n2)
    target2 = _make_boxes(kt2, n2)
    per_elem = loss_mod(pred2, target2, reduction_override="none")
    jax.block_until_ready(per_elem)
    ref2 = _ciou_reference(pred2, target2, 1e-6)
    assert per_elem.shape == (n2,)
    assert jnp.allclose(per_elem, ref2, atol=1e-4, rtol=1e-4), (
        float(jnp.max(jnp.abs(per_elem - ref2))))

    # --- weighted fused-sum path (n = 300) ---
    w = jax.random.uniform(kw, (n2,), jnp.float32, 0.1, 1.0)
    out_sum = loss_mod(pred2, target2, weight=w, reduction_override="sum")
    jax.block_until_ready(out_sum)
    ref_sum = jnp.sum(ref2 * w)
    assert jnp.allclose(out_sum, ref_sum, atol=1e-3, rtol=1e-3), (out_sum, ref_sum)

    print("KERNEL_OK")
</pallas_src>

<mosaic_0001>
module attributes {stable_mosaic.version = 11 : i64} {
  func.func @_ciou_sum_kernel(%arg0: i32, %arg1: memref<4x8x128xf32, #tpu.memory_space<vmem>>, %arg2: memref<4x8x128xf32, #tpu.memory_space<vmem>>, %arg3: memref<1x8x128xf32, #tpu.memory_space<vmem>>) attributes {dimension_semantics = [#tpu.dimension_semantics<parallel>], iteration_bounds = array<i64: 1>, scalar_prefetch = 0 : i64, scratch_operands = 0 : i64, tpu.core_type = #tpu.core_type<tc>, window_params = [{transform_indices = @transform_0, window_bounds = array<i64: 4, 8, 128>}, {transform_indices = @transform_1, window_bounds = array<i64: 4, 8, 128>}, {transform_indices = @transform_2, window_bounds = array<i64: 1, 8, 128>}]} {
    %c0 = arith.constant 0 : index
    %c0_0 = arith.constant 0 : index
    %c0_1 = arith.constant 0 : index
    %0 = vector.load %arg1[%c0, %c0_0, %c0_1] : memref<4x8x128xf32, #tpu.memory_space<vmem>>, vector<1x8x128xf32>
    %1 = vector.shape_cast %0 : vector<1x8x128xf32> to vector<8x128xf32>
    %c1 = arith.constant 1 : index
    %c0_2 = arith.constant 0 : index
    %c0_3 = arith.constant 0 : index
    %2 = vector.load %arg1[%c1, %c0_2, %c0_3] : memref<4x8x128xf32, #tpu.memory_space<vmem>>, vector<1x8x128xf32>
    %3 = vector.shape_cast %2 : vector<1x8x128xf32> to vector<8x128xf32>
    %c2 = arith.constant 2 : index
    %c0_4 = arith.constant 0 : index
    %c0_5 = arith.constant 0 : index
    %4 = vector.load %arg1[%c2, %c0_4, %c0_5] : memref<4x8x128xf32, #tpu.memory_space<vmem>>, vector<1x8x128xf32>
    %5 = vector.shape_cast %4 : vector<1x8x128xf32> to vector<8x128xf32>
    %c3 = arith.constant 3 : index
    %c0_6 = arith.constant 0 : index
    %c0_7 = arith.constant 0 : index
    %6 = vector.load %arg1[%c3, %c0_6, %c0_7] : memref<4x8x128xf32, #tpu.memory_space<vmem>>, vector<1x8x128xf32>
    %7 = vector.shape_cast %6 : vector<1x8x128xf32> to vector<8x128xf32>
    %c0_8 = arith.constant 0 : index
    %c0_9 = arith.constant 0 : index
    %c0_10 = arith.constant 0 : index
    %8 = vector.load %arg2[%c0_8, %c0_9, %c0_10] : memref<4x8x128xf32, #tpu.memory_space<vmem>>, vector<1x8x128xf32>
    %9 = vector.shape_cast %8 : vector<1x8x128xf32> to vector<8x128xf32>
    %c1_11 = arith.constant 1 : index
    %c0_12 = arith.constant 0 : index
    %c0_13 = arith.constant 0 : index
    %10 = vector.load %arg2[%c1_11, %c0_12, %c0_13] : memref<4x8x128xf32, #tpu.memory_space<vmem>>, vector<1x8x128xf32>
    %11 = vector.shape_cast %10 : vector<1x8x128xf32> to vector<8x128xf32>
    %c2_14 = arith.constant 2 : index
    %c0_15 = arith.constant 0 : index
    %c0_16 = arith.constant 0 : index
    %12 = vector.load %arg2[%c2_14, %c0_15, %c0_16] : memref<4x8x128xf32, #tpu.memory_space<vmem>>, vector<1x8x128xf32>
    %13 = vector.shape_cast %12 : vector<1x8x128xf32> to vector<8x128xf32>
    %c3_17 = arith.constant 3 : index
    %c0_18 = arith.constant 0 : index
    %c0_19 = arith.constant 0 : index
    %14 = vector.load %arg2[%c3_17, %c0_18, %c0_19] : memref<4x8x128xf32, #tpu.memory_space<vmem>>, vector<1x8x128xf32>
    %15 = vector.shape_cast %14 : vector<1x8x128xf32> to vector<8x128xf32>
    %16 = arith.minimumf %5, %13 : vector<8x128xf32>
    %17 = arith.maximumf %1, %9 : vector<8x128xf32>
    %18 = arith.subf %16, %17 : vector<8x128xf32>
    %cst = arith.constant 0.000000e+00 : f32
    %19 = vector.broadcast %cst : f32 to vector<8x128xf32>
    %20 = arith.maximumf %18, %19 : vector<8x128xf32>
    %21 = arith.minimumf %7, %15 : vector<8x128xf32>
    %22 = arith.maximumf %3, %11 : vector<8x128xf32>
    %23 = arith.subf %21, %22 : vector<8x128xf32>
    %cst_20 = arith.constant 0.000000e+00 : f32
    %24 = vector.broadcast %cst_20 : f32 to vector<8x128xf32>
    %25 = arith.maximumf %23, %24 : vector<8x128xf32>
    %26 = arith.mulf %20, %25 : vector<8x128xf32>
    %27 = arith.subf %5, %1 : vector<8x128xf32>
    %28 = arith.subf %7, %3 : vector<8x128xf32>
    %29 = arith.subf %13, %9 : vector<8x128xf32>
    %30 = arith.subf %15, %11 : vector<8x128xf32>
    %31 = arith.mulf %27, %28 : vector<8x128xf32>
    %32 = arith.mulf %29, %30 : vector<8x128xf32>
    %33 = arith.addf %31, %32 : vector<8x128xf32>
    %34 = arith.subf %33, %26 : vector<8x128xf32>
    %cst_21 = arith.constant 9.99999997E-7 : f32
    %35 = vector.broadcast %cst_21 : f32 to vector<8x128xf32>
    %36 = arith.addf %34, %35 : vector<8x128xf32>
    %37 = tpu.reciprocal %36 {approx = true} : vector<8x128xf32> -> vector<8x128xf32>
    %38 = arith.mulf %36, %37 : vector<8x128xf32>
    %cst_22 = arith.constant 2.000000e+00 : f32
    %39 = vector.broadcast %cst_22 : f32 to vector<8x128xf32>
    %40 = arith.subf %39, %38 : vector<8x128xf32>
    %41 = arith.mulf %37, %40 : vector<8x128xf32>
    %42 = arith.mulf %26, %41 : vector<8x128xf32>
    %43 = arith.maximumf %5, %13 : vector<8x128xf32>
    %44 = arith.minimumf %1, %9 : vector<8x128xf32>
    %45 = arith.subf %43, %44 : vector<8x128xf32>
    %cst_23 = arith.constant 0.000000e+00 : f32
    %46 = vector.broadcast %cst_23 : f32 to vector<8x128xf32>
    %47 = arith.maximumf %45, %46 : vector<8x128xf32>
    %48 = arith.maximumf %7, %15 : vector<8x128xf32>
    %49 = arith.minimumf %3, %11 : vector<8x128xf32>
    %50 = arith.subf %48, %49 : vector<8x128xf32>
    %cst_24 = arith.constant 0.000000e+00 : f32
    %51 = vector.broadcast %cst_24 : f32 to vector<8x128xf32>
    %52 = arith.maximumf %50, %51 : vector<8x128xf32>
    %53 = arith.mulf %47, %47 : vector<8x128xf32>
    %54 = arith.mulf %52, %52 : vector<8x128xf32>
    %55 = arith.addf %53, %54 : vector<8x128xf32>
    %cst_25 = arith.constant 9.99999997E-7 : f32
    %56 = vector.broadcast %cst_25 : f32 to vector<8x128xf32>
    %57 = arith.addf %55, %56 : vector<8x128xf32>
    %58 = arith.addf %9, %13 : vector<8x128xf32>
    %59 = arith.addf %1, %5 : vector<8x128xf32>
    %60 = arith.subf %58, %59 : vector<8x128xf32>
    %61 = arith.addf %11, %15 : vector<8x128xf32>
    %62 = arith.addf %3, %7 : vector<8x128xf32>
    %63 = arith.subf %61, %62 : vector<8x128xf32>
    %64 = arith.mulf %60, %60 : vector<8x128xf32>
    %65 = arith.mulf %63, %63 : vector<8x128xf32>
    %66 = arith.addf %64, %65 : vector<8x128xf32>
    %cst_26 = arith.constant 2.500000e-01 : f32
    %67 = vector.broadcast %cst_26 : f32 to vector<8x128xf32>
    %68 = arith.mulf %66, %67 : vector<8x128xf32>
    %cst_27 = arith.constant 9.99999997E-7 : f32
    %69 = vector.broadcast %cst_27 : f32 to vector<8x128xf32>
    %70 = arith.addf %28, %69 : vector<8x128xf32>
    %cst_28 = arith.constant 9.99999997E-7 : f32
    %71 = vector.broadcast %cst_28 : f32 to vector<8x128xf32>
    %72 = arith.addf %30, %71 : vector<8x128xf32>
    %73 = arith.mulf %29, %70 : vector<8x128xf32>
    %74 = arith.mulf %27, %72 : vector<8x128xf32>
    %75 = arith.subf %73, %74 : vector<8x128xf32>
    %76 = arith.mulf %70, %72 : vector<8x128xf32>
    %77 = arith.mulf %27, %29 : vector<8x128xf32>
    %78 = arith.addf %76, %77 : vector<8x128xf32>
    %79 = tpu.reciprocal %78 {approx = true} : vector<8x128xf32> -> vector<8x128xf32>
    %80 = arith.mulf %78, %79 : vector<8x128xf32>
    %cst_29 = arith.constant 2.000000e+00 : f32
    %81 = vector.broadcast %cst_29 : f32 to vector<8x128xf32>
    %82 = arith.subf %81, %80 : vector<8x128xf32>
    %83 = arith.mulf %79, %82 : vector<8x128xf32>
    %84 = arith.mulf %75, %83 : vector<8x128xf32>
    %85 = math.absf %84 : vector<8x128xf32>
    %86 = tpu.reciprocal %85 {approx = true} : vector<8x128xf32> -> vector<8x128xf32>
    %87 = arith.mulf %85, %86 : vector<8x128xf32>
    %cst_30 = arith.constant 2.000000e+00 : f32
    %88 = vector.broadcast %cst_30 : f32 to vector<8x128xf32>
    %89 = arith.subf %88, %87 : vector<8x128xf32>
    %90 = arith.mulf %86, %89 : vector<8x128xf32>
    %cst_31 = arith.constant 1.000000e+00 : f32
    %91 = vector.broadcast %cst_31 : f32 to vector<8x128xf32>
    %92 = arith.cmpf ole, %85, %91 : vector<8x128xf32>
    %93 = arith.select %92, %85, %90 : vector<8x128xi1>, vector<8x128xf32>
    %94 = arith.mulf %93, %93 : vector<8x128xf32>
    %cst_32 = arith.constant 2.083510e-02 : f32
    %95 = vector.broadcast %cst_32 : f32 to vector<8x128xf32>
    %96 = arith.mulf %95, %94 : vector<8x128xf32>
    %cst_33 = arith.constant -8.513300e-02 : f32
    %97 = vector.broadcast %cst_33 : f32 to vector<8x128xf32>
    %98 = arith.addf %96, %97 : vector<8x128xf32>
    %99 = arith.mulf %98, %94 : vector<8x128xf32>
    %cst_34 = arith.constant 1.801410e-01 : f32
    %100 = vector.broadcast %cst_34 : f32 to vector<8x128xf32>
    %101 = arith.addf %99, %100 : vector<8x128xf32>
    %102 = arith.mulf %101, %94 : vector<8x128xf32>
    %cst_35 = arith.constant -0.330299497 : f32
    %103 = vector.broadcast %cst_35 : f32 to vector<8x128xf32>
    %104 = arith.addf %102, %103 : vector<8x128xf32>
    %105 = arith.mulf %104, %94 : vector<8x128xf32>
    %cst_36 = arith.constant 9.998660e-01 : f32
    %106 = vector.broadcast %cst_36 : f32 to vector<8x128xf32>
    %107 = arith.addf %105, %106 : vector<8x128xf32>
    %108 = arith.mulf %107, %93 : vector<8x128xf32>
    %cst_37 = arith.constant 1.57079637 : f32
    %109 = vector.broadcast %cst_37 : f32 to vector<8x128xf32>
    %110 = arith.subf %109, %108 : vector<8x128xf32>
    %111 = arith.select %92, %108, %110 : vector<8x128xi1>, vector<8x128xf32>
    %cst_38 = arith.constant 0.000000e+00 : f32
    %112 = vector.broadcast %cst_38 : f32 to vector<8x128xf32>
    %113 = arith.cmpf olt, %84, %112 : vector<8x128xf32>
    %cst_39 = arith.constant 0.000000e+00 : f32
    %114 = vector.broadcast %cst_39 : f32 to vector<8x128xf32>
    %115 = arith.subf %114, %111 : vector<8x128xf32>
    %116 = arith.select %113, %115, %111 : vector<8x128xi1>, vector<8x128xf32>
    %cst_40 = arith.constant 0.405284733 : f32
    %117 = vector.broadcast %cst_40 : f32 to vector<8x128xf32>
    %118 = arith.mulf %117, %116 : vector<8x128xf32>
    %119 = arith.mulf %118, %116 : vector<8x128xf32>
    %120 = tpu.reciprocal %57 {approx = true} : vector<8x128xf32> -> vector<8x128xf32>
    %121 = arith.mulf %57, %120 : vector<8x128xf32>
    %cst_41 = arith.constant 2.000000e+00 : f32
    %122 = vector.broadcast %cst_41 : f32 to vector<8x128xf32>
    %123 = arith.subf %122, %121 : vector<8x128xf32>
    %124 = arith.mulf %120, %123 : vector<8x128xf32>
    %125 = arith.mulf %68, %124 : vector<8x128xf32>
    %126 = arith.mulf %119, %119 : vector<8x128xf32>
    %cst_42 = arith.constant 1.000000e+00 : f32
    %127 = vector.broadcast %cst_42 : f32 to vector<8x128xf32>
    %128 = arith.subf %127, %42 : vector<8x128xf32>
    %129 = arith.addf %128, %119 : vector<8x128xf32>
    %130 = tpu.reciprocal %129 {approx = true} : vector<8x128xf32> -> vector<8x128xf32>
    %131 = arith.mulf %129, %130 : vector<8x128xf32>
    %cst_43 = arith.constant 2.000000e+00 : f32
    %132 = vector.broadcast %cst_43 : f32 to vector<8x128xf32>
    %133 = arith.subf %132, %131 : vector<8x128xf32>
    %134 = arith.mulf %130, %133 : vector<8x128xf32>
    %135 = arith.mulf %126, %134 : vector<8x128xf32>
    %136 = arith.addf %125, %135 : vector<8x128xf32>
    %137 = arith.subf %42, %136 : vector<8x128xf32>
    %cst_44 = arith.constant 1.000000e+00 : f32
    %138 = vector.broadcast %cst_44 : f32 to vector<8x128xf32>
    %139 = arith.subf %138, %137 : vector<8x128xf32>
    %140 = tpu.iota {dimensions = array<i32: 0>} : vector<8x128xi32>
    %141 = tpu.iota {dimensions = array<i32: 1>} : vector<8x128xi32>
    %c8_i32 = arith.constant 8 : i32
    %142 = arith.muli %arg0, %c8_i32 : i32
    %143 = vector.broadcast %142 : i32 to vector<8x128xi32>
    %144 = arith.addi %143, %140 : vector<8x128xi32>
    %c128_i32 = arith.constant 128 : i32
    %145 = vector.broadcast %c128_i32 : i32 to vector<8x128xi32>
    %146 = arith.muli %144, %145 : vector<8x128xi32>
    %147 = arith.addi %146, %141 : vector<8x128xi32>
    %c8_i32_45 = arith.constant 8 : i32
    %148 = vector.broadcast %c8_i32_45 : i32 to vector<8x128xi32>
    %149 = arith.cmpi slt, %147, %148 : vector<8x128xi32>
    %cst_46 = arith.constant 0.000000e+00 : f32
    %150 = vector.broadcast %cst_46 : f32 to vector<8x128xf32>
    %151 = arith.select %149, %139, %150 : vector<8x128xi1>, vector<8x128xf32>
    %cst_47 = arith.constant dense<0.000000e+00> : vector<128xf32>
    %152 = vector.multi_reduction <add>, %151, %cst_47 [0] : vector<8x128xf32> to vector<128xf32>
    %153 = vector.shape_cast %152 : vector<128xf32> to vector<1x128xf32>
    %154 = tpu.iota {dimensions = array<i32: 1>} : vector<1x8x128xi32>
    %c0_i32 = arith.constant 0 : i32
    %155 = vector.broadcast %c0_i32 : i32 to vector<1x8x128xi32>
    %156 = arith.cmpi eq, %154, %155 : vector<1x8x128xi32>
    %157 = vector.shape_cast %153 : vector<1x128xf32> to vector<1x1x128xf32>
    %cst_48 = arith.constant 0.000000e+00 : f32
    %158 = vector.shape_cast %157 : vector<1x1x128xf32> to vector<1x1x128xf32>
    %159 = vector.broadcast %158 : vector<1x1x128xf32> to vector<1x8x128xf32>
    %160 = vector.broadcast %cst_48 : f32 to vector<1x8x128xf32>
    %161 = arith.select %156, %159, %160 : vector<1x8x128xi1>, vector<1x8x128xf32>
    %c0_49 = arith.constant 0 : index
    %c0_50 = arith.constant 0 : index
    %c0_51 = arith.constant 0 : index
    %162 = vector.load %arg3[%c0_49, %c0_50, %c0_51] : memref<1x8x128xf32, #tpu.memory_space<vmem>>, vector<1x8x128xf32>
    tpu.vector_store %arg3[%c0_49, %c0_50, %c0_51], %161 {strides = array<i32>} : memref<1x8x128xf32, #tpu.memory_space<vmem>>, vector<1x8x128xf32>,
    return
  }
  func.func @transform_0(%arg0: i32) -> (i32, i32, i32) {
    %c0_i32 = arith.constant 0 : i32
    %c0_i32_0 = arith.constant 0 : i32
    %c0_i32_1 = arith.constant 0 : i32
    return %c0_i32, %arg0, %c0_i32_0 : i32, i32, i32
  }
  func.func @transform_1(%arg0: i32) -> (i32, i32, i32) {
    %c0_i32 = arith.constant 0 : i32
    %c0_i32_0 = arith.constant 0 : i32
    %c0_i32_1 = arith.constant 0 : i32
    return %c0_i32, %arg0, %c0_i32_0 : i32, i32, i32
  }
  func.func @transform_2(%arg0: i32) -> (i32, i32, i32) {
    %c0_i32 = arith.constant 0 : i32
    %c0_i32_0 = arith.constant 0 : i32
    %c0_i32_1 = arith.constant 0 : i32
    return %arg0, %c0_i32, %c0_i32_0 : i32, i32, i32
  }
}

</mosaic_0001>

<bundles_post_ra>
// kernel: tpu_custom_call.1
= control target key start
LH: loop header
LB: loop body
LE: loop exit
PB: predicated region body
PF: predicated region fallthrough
CT: control target
= control target key end

     0   :  { %7 = vsyncpa [#allocation3], 0  ;;  %s339_s0 = inlined_call_operand.hbm [shape: f32[4,8,128], index: 0, kind: input, shape index: {}]   ;;  %s340_s1 = inlined_call_operand.hbm [shape: f32[4,8,128], index: 1, kind: input, shape index: {}]   ;;  %s341_s2 = inlined_call_operand.hbm [shape: f32[1,8,128], index: 2, kind: output, shape index: {}]  }
   0x1   :  { %8 = vsyncpa [#allocation6], 0 }
   0x2   :  { %9 = vsyncpa [#allocation4], 0  ;;  %s14_s11 = sshll.u32 %s339_s0, 4  ;;  %s287_s12 = smov [#allocation2]   ;;  %s15_s11 = int_to_ptr.hbm [resolvable:$true] %s14_s11 }
   0x3   :  { %s16_s13 = sshll.u32 %s287_s12, 4  ;;  %s27_s16 = sshll.u32 %s340_s1, 4  ;;  %s17_s13 = int_to_ptr.vmem [resolvable:$true] %s16_s13  ;;  %s28_s16 = int_to_ptr.hbm [resolvable:$true] %s27_s16 }
   0x4   :  { %s288_s17 = smov 128   ;;  %s289_s18 = smov 8  }
   0x5   :  { %22 = dma.hbm_to_vmem [thread:$0]  %s15_s11, 512, %s17_s13, [#allocation3], %s288_s17, %s288_s17, %s289_s18  }
   0x6   :  { %s290_s19 = smov [#allocation5]  }
   0x7   :  { %s29_s20 = sshll.u32 %s290_s19, 4  ;;  %s30_s20 = int_to_ptr.vmem [resolvable:$true] %s29_s20 }
   0x8   :  { %35 = dma.hbm_to_vmem [thread:$0]  %s28_s16, 512, %s30_s20, [#allocation6], %s288_s17, %s288_s17, %s289_s18  }
   0x9   :  { %281 = dma.done.wait [#allocation3], 512  }
   0xa   :  { %282 = vsyncadd [#allocation3], 4294966784 }
   0xb   :  { %283 = dma.done.wait [#allocation6], 512  }
   0xc   :  { %284 = vsyncadd [#allocation6], 4294966784  ;;  %v313_v0 = vld [vmem:[#allocation2] sm:$0xff]  ;;  %v315_v1 = vld [vmem:[#allocation2 + $0x10] sm:$0xff]  ;;  %s291_s0 = smov [#allocation7]   ;;  %s183_s23 = sshll.u32 %s341_s2, 4  ;;  %s184_s23 = int_to_ptr.hbm [resolvable:$true] %s183_s23 }
   0xd   :  { %v317_v2 = vld [vmem:[#allocation2 + $0x8] sm:$0xff]  ;;  %v50_v3 = vld [vmem:[#allocation2 + $0x18] sm:$0xff]  ;;  %v51_v4 = vld [vmem:[#allocation5] sm:$0xff]  ;;  %v94_v5 = vadd.f32 %v315_v1, %v313_v0  ;;  %v67_v10 = vsub.f32 %v315_v1, %v313_v0  ;;  %s181_s1 = sshll.u32 %s291_s0, 4  ;;  %s182_s1 = int_to_ptr.vmem [resolvable:$true] %s181_s1 }
   0xe   :  { %v53_v6 = vld [vmem:[#allocation5 + $0x8] sm:$0xff]  ;;  %v55_v7 = vld [vmem:[#allocation5 + $0x10] sm:$0xff]  ;;  %v57_v8 = vld [vmem:[#allocation5 + $0x18] sm:$0xff]  ;;  %v68_v9 = vsub.f32 %v50_v3, %v317_v2  ;;  %v97_v15 = vadd.f32 %v50_v3, %v317_v2  ;;  %v59_v31 = vmax.f32 %v313_v0, %v51_v4  ;;  %v82_v54 = vmin.f32 %v313_v0, %v51_v4 }
   0xf   :  { %v69_v11 = vsub.f32 %v55_v7, %v51_v4  ;;  %v70_v12 = vsub.f32 %v57_v8, %v53_v6  ;;  %v93_v13 = vadd.f32 %v55_v7, %v51_v4  ;;  %v96_v14 = vadd.f32 %v57_v8, %v53_v6 }
  0x10   :  { %v103_v18 = vadd.f32 1e-06, %v68_v9  ;;  %v58_v30 = vmin.f32 %v315_v1, %v55_v7  ;;  %v62_v32 = vmin.f32 %v50_v3, %v57_v8  ;;  %v63_v33 = vmax.f32 %v317_v2, %v53_v6 }
  0x11   :  { %v95_v16 = vsub.f32 %v93_v13, %v94_v5  ;;  %v98_v17 = vsub.f32 %v96_v14, %v97_v15  ;;  %v104_v20 = vadd.f32 1e-06, %v70_v12  ;;  %v109_v21 = vmul.f32 %v69_v11, %v67_v10 }
  0x12   :  { %v105_v26 = vmul.f32 %v103_v18, %v69_v11  ;;  %v60_v37 = vsub.f32 %v58_v30, %v59_v31  ;;  %v64_v38 = vsub.f32 %v62_v32, %v63_v33  ;;  %v71_v43 = vmul.f32 %v68_v9, %v67_v10 }
  0x13   :  { %v99_v19 = vmul.f32 %v95_v16, %v95_v16  ;;  %v100_v22 = vmul.f32 %v98_v17, %v98_v17  ;;  %v108_v23 = vmul.f32 %v104_v20, %v103_v18  ;;  %v106_v27 = vmul.f32 %v104_v20, %v67_v10 }
  0x14   :  { %v61_v41 = vmax.f32 %v60_v37, 0.0  ;;  %v65_v42 = vmax.f32 %v64_v38, 0.0  ;;  %v72_v44 = vmul.f32 %v70_v12, %v69_v11  ;;  %v81_v53 = vmax.f32 %v315_v1, %v55_v7 }
  0x15   :  { %v325_v24 = vadd.f32 %v100_v22, %v99_v19  ;;  %v110_v25 = vadd.f32 %v109_v21, %v108_v23  ;;  %v107_v34 = vsub.f32 %v105_v26, %v106_v27  ;;  %v85_v55 = vmax.f32 %v50_v3, %v57_v8 }
  0x16   :  { %v66_v45 = vmul.f32 %v65_v42, %v61_v41  ;;  %v73_v46 = vadd.f32 %v72_v44, %v71_v43  ;;  %v86_v56 = vmin.f32 %v317_v2, %v53_v6  ;;  %v83_v59 = vsub.f32 %v81_v53, %v82_v54 }
  0x17   :  { %199 = vrcp.f32 %v110_v25  ;;  %v102_v32 = vmul.f32 0.25, %v325_v24 }
  0x18   :  { %v74_v48 = vsub.f32 %v73_v46, %v66_v45  ;;  %v87_v60 = vsub.f32 %v85_v55, %v86_v56  ;;  %v84_v63 = vmax.f32 %v83_v59, 0.0 }
  0x1a   :  { %v75_v51 = vadd.f32 1e-06, %v74_v48  ;;  %v88_v5 = vmax.f32 %v87_v60, 0.0  ;;  %v89_v1 = vmul.f32 %v84_v63, %v84_v63 }
  0x1c   :  { %v90_v7 = vmul.f32 %v88_v5, %v88_v5 }
  0x1d   :  { %v200_v28 = vpop.eup %199 }
  0x1e   :  { %v112_v29 = vmul.f32 %v200_v28, %v110_v25  ;;  %v91_v2 = vadd.f32 %v90_v7, %v89_v1 }
  0x20   :  { %v113_v35 = vsub.f32 2.0, %v112_v29  ;;  %v92_v14 = vadd.f32 1e-06, %v91_v2 }
  0x22   :  { %v114_v36 = vmul.f32 %v200_v28, %v113_v35  ;;  %v156_v28 = vlaneseq }
  0x24   :  { %v115_v39 = vmul.f32 %v114_v36, %v107_v34  ;;  %v157_v31 = vshrl.u32 %v156_v28, 7  ;;  %v159_v37 = vand.u32 127, %v156_v28 }
  0x26   :  { %v116_v40 = vand.u32 2147483647, %v115_v39  ;;  %vm135_vm1 = vcmp.lt.f32.partialorder %v115_v39, 0.0  ;;  %v163_v38 = vmul.u32 128, %v157_v31  ;;  %vm173_vm3 = vcmp.eq.s32.totalorder %v157_v31, 0 }
  0x28   :  { %201 = vrcp.f32 %v116_v40  ;;  %vm121_vm0 = vcmp.le.f32.partialorder %v116_v40, 1.0  ;;  %v164_v42 = vadd.s32 %v163_v38, %v159_v37 }
  0x29   :  { %203 = vrcp.f32 %v75_v51 }
  0x2a   :  { %205 = vrcp.f32 %v92_v14  ;;  %vm165_vm2 = vcmp.lt.s32.totalorder %v164_v42, 8 }
  0x2e   :  { %v202_v47 = vpop.eup %201 }
  0x2f   :  { %v118_v49 = vmul.f32 %v202_v47, %v116_v40  ;;  %v204_v10 = vpop.eup %203 }
  0x30   :  { %v77_v12 = vmul.f32 %v204_v10, %v75_v51  ;;  %v206_v23 = vpop.eup %205 }
  0x31   :  { %v119_v50 = vsub.f32 2.0, %v118_v49  ;;  %v141_v27 = vmul.f32 %v206_v23, %v92_v14 }
  0x32   :  { %v78_v4 = vsub.f32 2.0, %v77_v12 }
  0x33   :  { %v120_v52 = vmul.f32 %v202_v47, %v119_v50  ;;  %v142_v29 = vsub.f32 2.0, %v141_v27 }
  0x34   :  { %v79_v13 = vmul.f32 %v204_v10, %v78_v4 }
  0x35   :  { %v122_v57 = vsel %vm121_vm0, %v116_v40, %v120_v52  ;;  %v143_v33 = vmul.f32 %v206_v23, %v142_v29 }
  0x36   :  { %v123_v58 = vmul.f32 %v122_v57, %v122_v57  ;;  %v80_v17 = vmul.f32 %v79_v13, %v66_v45 }
  0x37   :  { %v144_v39 = vmul.f32 %v143_v33, %v102_v32 }
  0x38   :  { %v124_v61 = vmul.f32 0.0208351, %v123_v58  ;;  %v146_v22 = vsub.f32 1.0, %v80_v17 }
  0x3a   :  { %v125_v62 = vadd.f32 -0.085133, %v124_v61 }
  0x3c   :  { %v126_v9 = vmul.f32 %v125_v62, %v123_v58 }
  0x3e   :  { %v127_v11 = vadd.f32 0.180141, %v126_v9 }
  0x40   :  { %v128_v0 = vmul.f32 %v127_v11, %v123_v58 }
  0x42   :  { %v129_v3 = vadd.f32 -0.3302995, %v128_v0 }
  0x44   :  { %v130_v6 = vmul.f32 %v129_v3, %v123_v58 }
  0x46   :  { %v131_v8 = vadd.f32 0.999866, %v130_v6 }
  0x48   :  { %v132_v15 = vmul.f32 %v131_v8, %v122_v57 }
  0x4a   :  { %v133_v16 = vsub.f32 1.5707964, %v132_v15 }
  0x4c   :  { %v134_v18 = vsel %vm121_vm0, %v132_v15, %v133_v16 }
  0x4d   :  { %v136_v19 = vsub.f32 0.0, %v134_v18 }
  0x4f   :  { %v137_v20 = vsel %vm135_vm1, %v136_v19, %v134_v18 }
  0x50   :  { %v138_v21 = vmul.f32 0.40528473, %v137_v20 }
  0x52   :  { %v139_v25 = vmul.f32 %v138_v21, %v137_v20 }
  0x54   :  { %v147_v26 = vadd.f32 %v146_v22, %v139_v25  ;;  %v145_v35 = vmul.f32 %v139_v25, %v139_v25 }
  0x56   :  { %207 = vrcp.f32 %v147_v26 }
  0x5c   :  { %v208_v30 = vpop.eup %207 }
  0x5d   :  { %v149_v34 = vmul.f32 %v208_v30, %v147_v26 }
  0x5f   :  { %v150_v36 = vsub.f32 2.0, %v149_v34 }
  0x61   :  { %v151_v40 = vmul.f32 %v208_v30, %v150_v36 }
  0x63   :  { %v152_v41 = vmul.f32 %v151_v40, %v145_v35 }
  0x65   :  { %v153_v43 = vadd.f32 %v152_v41, %v144_v39 }
  0x67   :  { %v154_v44 = vsub.f32 %v80_v17, %v153_v43 }
  0x69   :  { %v155_v45 = vsub.f32 1.0, %v154_v44 }
  0x6b   :  { %v166_v46 = vsel %vm165_vm2, %v155_v45, 0.0 }
  0x6c   :  { %v167_v47 = vrot.slane %v166_v46, 4 }
  0x6e   :  { %v168_v48 = vadd.f32 %v167_v47, %v166_v46 }
  0x70   :  { %v169_v49 = vrot.slane %v168_v48, 2 }
  0x72   :  { %v170_v50 = vadd.f32 %v169_v49, %v168_v48 }
  0x74   :  { %v171_v24 = vrot.slane %v170_v50, 1 }
  0x76   :  { %v172_v51 = vadd.f32 %v171_v24, %v170_v50 }
  0x78   :  { %v174_v52 = vsel %vm173_vm3, %v172_v51, 0.0 }
  0x79   :  { %175 = vst [vmem:[#allocation7] sm:$0xff] %v174_v52 }
  0x7a   :  { %186 = dma.vmem_to_hbm [thread:$0]  %s182_s1, 128, %s184_s23, [#allocation4]  }
  0x7b   :  { %285 = dma.done.wait [#allocation4], 128  }
  0x7c   :  { %286 = vsyncadd [#allocation4], 4294967168 }
  0x7d   :  { %191 = vsyncpa [#allocation3], 1 }
  0x7e   :  { %192 = vsyncpa [#allocation6], 1 }
  0x7f   :  { %193 = vsyncpa [#allocation4], 1 }

</bundles_post_ra>
